<compile_context>
chip_gen: v5e
topology: v5e:2x2
jax: 0.10.0
libtpu: 0.0.40
codegen_flags: <defaults>
</compile_context>

<pallas_src>
import numpy as np
import jax
import jax.numpy as jnp
from jax.experimental import pallas as pl
from jax.experimental.pallas import tpu as pltpu


def actor_kernel(x_ref, wt_ref, b_ref, alpha_ref, beta_ref, o_ref):
    """Fused linear + single-tanh activation.

    x:     (tb, D_in)   activation tile
    wt:    (D_in, Np)   pre-transposed, pre-scaled weight (resident)
    b:     (1, Np)      pre-scaled bias
    alpha: (1, Np)      per-column output scale (1 for tanh cols, 0.5 sigmoid)
    beta:  (1, Np)      per-column output offset (0 for tanh cols, 0.5 sigmoid)
    """
    xv = x_ref[...].astype(wt_ref.dtype)          # no-op for f32 weights
    z = jnp.dot(xv, wt_ref[...], preferred_element_type=jnp.float32)
    t = jnp.tanh(z + b_ref[...])                  # one EUP op per element
    o_ref[...] = (t * alpha_ref[...] + beta_ref[...]).astype(o_ref.dtype)


def prepare_actor_params(weight, bias, symmetry=None, sigma_ampl=0.1,
                         matmul_dtype=jnp.float32):
    """One-time parameter preparation (NOT in the hot path).

    weight:   (2*D_out, D_in)  torch Linear layout
    bias:     (2*D_out,)
    symmetry: (D_out,) of 0/1, or None (=> all ones)
    """
    weight = jnp.asarray(weight, jnp.float32)
    bias = jnp.asarray(bias, jnp.float32)
    two_out, d_in = weight.shape
    d_out = two_out // 2
    if symmetry is None:
        symmetry = jnp.ones((d_out,), jnp.float32)
    sym = jnp.asarray(symmetry, jnp.float32) == 1.0          # exact, matches torch
    use_tanh = jnp.concatenate([sym, jnp.zeros((d_out,), bool)])      # (N,)

    # Fold sigma_ampl (and the /2 of the tanh-form sigmoid) into W, b.
    scale = jnp.where(use_tanh, sigma_ampl, 0.5 * sigma_ampl).astype(jnp.float32)
    alpha = jnp.where(use_tanh, 1.0, 0.5).astype(jnp.float32)
    beta = jnp.where(use_tanh, 0.0, 0.5).astype(jnp.float32)

    wt = (weight * scale[:, None]).T                                   # (D_in, N)
    b = bias * scale                                                   # (N,)

    # Lane-dense output: pad columns to a multiple of 128 (zero weight/bias,
    # padded columns are sliced off once in the wrapper).
    n_pad = ((two_out + 127) // 128) * 128
    pad = n_pad - two_out
    if pad:
        wt = jnp.pad(wt, ((0, 0), (0, pad)))
        b = jnp.pad(b, (0, pad))
        alpha = jnp.pad(alpha, (0, pad))
        beta = jnp.pad(beta, (0, pad))

    wt = wt.astype(matmul_dtype)   # bf16 on v6e/v7x halves resident weight
    return (wt, b.reshape(1, n_pad), alpha.reshape(1, n_pad),
            beta.reshape(1, n_pad), int(two_out))


def actor_forward(x, params, *, block_b=512, force_pallas=False):
    """Forward pass. x: (B, D_in) f32; params from prepare_actor_params."""
    wt, b, alpha, beta, n_out = params
    x = jnp.asarray(x, jnp.float32)
    B, d_in = x.shape
    n_pad = wt.shape[1]

    # Tiny-problem dispatch: pallas_call launch + DMA setup dwarfs compute.
    if not force_pallas and B * n_pad <= 32 * 1024:
        t = jnp.tanh(x.astype(wt.dtype) @ wt + b)
        out = t * alpha + beta
        return out[:, :n_out] if n_pad != n_out else out

    # Batch tiling: Pallas masks the ragged tail automatically (no pad/slice).
    if B <= 8:
        tb = B                                        # single full block
    else:
        # >= 2 grid steps so the parallel axis shards across v7x's 2 TCs.
        tb = min(block_b, max(8, ((pl.cdiv(B, 2) + 7) // 8) * 8))
    grid = (pl.cdiv(B, tb),)

    # Explicit scoped-VMEM budget: double-buffered x/out tiles + resident
    # weight (x2, default buffering) + small per-column vectors, with headroom.
    w_itemsize = jnp.dtype(wt.dtype).itemsize
    vmem_need = (2 * tb * d_in * 4 + 2 * tb * n_pad * 4
                 + 2 * d_in * n_pad * w_itemsize + 6 * n_pad * 4)
    vmem_limit = int(min(max(2 * vmem_need, 32 * 1024 * 1024),
                         64 * 1024 * 1024))

    out = pl.pallas_call(
        actor_kernel,
        out_shape=jax.ShapeDtypeStruct((B, n_pad), jnp.float32),
        grid=grid,
        in_specs=[
            pl.BlockSpec((tb, d_in), lambda i: (i, 0)),
            pl.BlockSpec((d_in, n_pad), lambda i: (0, 0)),
            pl.BlockSpec((1, n_pad), lambda i: (0, 0)),
            pl.BlockSpec((1, n_pad), lambda i: (0, 0)),
            pl.BlockSpec((1, n_pad), lambda i: (0, 0)),
        ],
        out_specs=pl.BlockSpec((tb, n_pad), lambda i: (i, 0)),
        compiler_params=pltpu.CompilerParams(
            dimension_semantics=("parallel",),
            vmem_limit_bytes=vmem_limit),
    )(x, wt, b, alpha, beta)

    return out[:, :n_out] if n_pad != n_out else out


def actor_forward_ref(x, weight, bias, symmetry, sigma_ampl=0.1):
    """Pure-JAX reference replicating the PyTorch forward (binary symmetry)."""
    d_out = weight.shape[0] // 2
    z = x @ weight.T + bias
    z_m = z[:, :d_out]
    means = jnp.where(
        symmetry.reshape(1, d_out) == 1.0,
        jnp.tanh(sigma_ampl * z_m),
        jax.nn.sigmoid(sigma_ampl * z_m),
    )
    sigms = jax.nn.sigmoid(sigma_ampl * z[:, d_out:])
    return jnp.concatenate([means, sigms], axis=1)


if __name__ == "__main__":
    batch, input_size, output_size = 4, 32, 8
    sigma_ampl = 0.1

    key = jax.random.PRNGKey(0)
    kx, kw, kb, kx2 = jax.random.split(key, 4)
    x = jax.random.normal(kx, (batch, input_size), jnp.float32)
    weight = 0.1 * jax.random.normal(kw, (2 * output_size, input_size), jnp.float32)
    bias = 0.1 * jax.random.normal(kb, (2 * output_size,), jnp.float32)
    symmetry = jnp.asarray(np.array([1, 1, 0, 1, 0, 1, 1, 0], dtype=np.float32))

    params = prepare_actor_params(weight, bias, symmetry,
                                  sigma_ampl=sigma_ampl,
                                  matmul_dtype=jnp.float32)
    ref = actor_forward_ref(x, weight, bias, symmetry, sigma_ampl)

    # 1) Pallas kernel, small batch (single block, grid=(1,)).
    out = jax.block_until_ready(actor_forward(x, params, force_pallas=True))
    np.testing.assert_allclose(np.asarray(out), np.asarray(ref),
                               rtol=1e-5, atol=1e-5)

    # 2) Pallas kernel, larger batch: ragged tail handled by Pallas masking,
    #    batch grid split into >= 2 parallel steps.
    x_big = jax.random.normal(kx2, (300, input_size), jnp.float32)
    out_big = jax.block_until_ready(actor_forward(x_big, params, force_pallas=True))
    ref_big = actor_forward_ref(x_big, weight, bias, symmetry, sigma_ampl)
    np.testing.assert_allclose(np.asarray(out_big), np.asarray(ref_big),
                               rtol=1e-5, atol=1e-5)

    # 3) Size-based dispatch path (tiny problems route to fused XLA).
    out_small = jax.block_until_ready(actor_forward(x, params))
    np.testing.assert_allclose(np.asarray(out_small), np.asarray(ref),
                               rtol=1e-5, atol=1e-5)

    print("KERNEL_OK")
</pallas_src>

<mosaic_0001>
module attributes {stable_mosaic.version = 11 : i64} {
  func.func @actor_kernel(%arg0: i32, %arg1: memref<4x32xf32, #tpu.memory_space<vmem>>, %arg2: memref<32x128xf32, #tpu.memory_space<vmem>>, %arg3: memref<1x128xf32, #tpu.memory_space<vmem>>, %arg4: memref<1x128xf32, #tpu.memory_space<vmem>>, %arg5: memref<1x128xf32, #tpu.memory_space<vmem>>, %arg6: memref<4x128xf32, #tpu.memory_space<vmem>>) attributes {dimension_semantics = [#tpu.dimension_semantics<parallel>], iteration_bounds = array<i64: 1>, scalar_prefetch = 0 : i64, scratch_operands = 0 : i64, tpu.core_type = #tpu.core_type<tc>, window_params = [{transform_indices = @transform_0, window_bounds = array<i64: 4, 32>}, {pipeline_mode = #tpu.pipeline_mode<synchronous>, transform_indices = @transform_1, window_bounds = array<i64: 32, 128>}, {pipeline_mode = #tpu.pipeline_mode<synchronous>, transform_indices = @transform_2, window_bounds = array<i64: 1, 128>}, {pipeline_mode = #tpu.pipeline_mode<synchronous>, transform_indices = @transform_3, window_bounds = array<i64: 1, 128>}, {pipeline_mode = #tpu.pipeline_mode<synchronous>, transform_indices = @transform_4, window_bounds = array<i64: 1, 128>}, {transform_indices = @transform_5, window_bounds = array<i64: 4, 128>}]} {
    %c0 = arith.constant 0 : index
    %c0_0 = arith.constant 0 : index
    %0 = vector.load %arg1[%c0, %c0_0] : memref<4x32xf32, #tpu.memory_space<vmem>>, vector<4x32xf32>
    %c0_1 = arith.constant 0 : index
    %c0_2 = arith.constant 0 : index
    %1 = vector.load %arg2[%c0_1, %c0_2] : memref<32x128xf32, #tpu.memory_space<vmem>>, vector<32x128xf32>
    %cst = arith.constant dense<0.000000e+00> : vector<4x128xf32>
    %2 = tpu.matmul %0, %1, %cst {dimension_numbers = #tpu.dot_dimension_numbers<[1], [0], [0], [1], [0, 0, 1, 1], [], []>} : vector<4x32xf32>, vector<32x128xf32>, vector<4x128xf32> -> vector<4x128xf32>
    %c0_3 = arith.constant 0 : index
    %c0_4 = arith.constant 0 : index
    %3 = vector.load %arg3[%c0_3, %c0_4] : memref<1x128xf32, #tpu.memory_space<vmem>>, vector<1x128xf32>
    %4 = vector.broadcast %3 : vector<1x128xf32> to vector<4x128xf32>
    %5 = arith.addf %2, %4 : vector<4x128xf32>
    %6 = math.tanh %5 : vector<4x128xf32>
    %c0_5 = arith.constant 0 : index
    %c0_6 = arith.constant 0 : index
    %7 = vector.load %arg4[%c0_5, %c0_6] : memref<1x128xf32, #tpu.memory_space<vmem>>, vector<1x128xf32>
    %8 = vector.broadcast %7 : vector<1x128xf32> to vector<4x128xf32>
    %9 = arith.mulf %6, %8 : vector<4x128xf32>
    %c0_7 = arith.constant 0 : index
    %c0_8 = arith.constant 0 : index
    %10 = vector.load %arg5[%c0_7, %c0_8] : memref<1x128xf32, #tpu.memory_space<vmem>>, vector<1x128xf32>
    %11 = vector.broadcast %10 : vector<1x128xf32> to vector<4x128xf32>
    %12 = arith.addf %9, %11 : vector<4x128xf32>
    %c0_9 = arith.constant 0 : index
    %c0_10 = arith.constant 0 : index
    %13 = vector.load %arg6[%c0_9, %c0_10] : memref<4x128xf32, #tpu.memory_space<vmem>>, vector<4x128xf32>
    tpu.vector_store %arg6[%c0_9, %c0_10], %12 {strides = array<i32>} : memref<4x128xf32, #tpu.memory_space<vmem>>, vector<4x128xf32>,
    return
  }
  func.func @transform_0(%arg0: i32) -> (i32, i32) {
    %c0_i32 = arith.constant 0 : i32
    %c0_i32_0 = arith.constant 0 : i32
    return %arg0, %c0_i32 : i32, i32
  }
  func.func @transform_1(%arg0: i32) -> (i32, i32) {
    %c0_i32 = arith.constant 0 : i32
    %c0_i32_0 = arith.constant 0 : i32
    %c0_i32_1 = arith.constant 0 : i32
    return %c0_i32, %c0_i32_0 : i32, i32
  }
  func.func @transform_2(%arg0: i32) -> (i32, i32) {
    %c0_i32 = arith.constant 0 : i32
    %c0_i32_0 = arith.constant 0 : i32
    %c0_i32_1 = arith.constant 0 : i32
    return %c0_i32, %c0_i32_0 : i32, i32
  }
  func.func @transform_3(%arg0: i32) -> (i32, i32) {
    %c0_i32 = arith.constant 0 : i32
    %c0_i32_0 = arith.constant 0 : i32
    %c0_i32_1 = arith.constant 0 : i32
    return %c0_i32, %c0_i32_0 : i32, i32
  }
  func.func @transform_4(%arg0: i32) -> (i32, i32) {
    %c0_i32 = arith.constant 0 : i32
    %c0_i32_0 = arith.constant 0 : i32
    %c0_i32_1 = arith.constant 0 : i32
    return %c0_i32, %c0_i32_0 : i32, i32
  }
  func.func @transform_5(%arg0: i32) -> (i32, i32) {
    %c0_i32 = arith.constant 0 : i32
    %c0_i32_0 = arith.constant 0 : i32
    return %arg0, %c0_i32 : i32, i32
  }
}

</mosaic_0001>

<bundles_post_ra>
// kernel: tpu_custom_call.1
= control target key start
LH: loop header
LB: loop body
LE: loop exit
PB: predicated region body
PF: predicated region fallthrough
CT: control target
= control target key end

     0   :  { %10 = vsyncpa [#allocation3], 0  ;;  %s256_s0 = inlined_call_operand.hbm [shape: f32[4,32], index: 0, kind: input, shape index: {}]   ;;  %s257_s1 = inlined_call_operand.hbm [shape: f32[32,128], index: 1, kind: input, shape index: {}]   ;;  %s258_s2 = inlined_call_operand.vmem [shape: f32[1,128], index: 2, kind: input, shape index: {}]   ;;  %s259_s3 = inlined_call_operand.vmem [shape: f32[1,128], index: 3, kind: input, shape index: {}]   ;;  %s260_s4 = inlined_call_operand.vmem [shape: f32[1,128], index: 4, kind: input, shape index: {}]   ;;  %s261_s5 = inlined_call_operand.hbm [shape: f32[4,128], index: 5, kind: output, shape index: {}]  }
   0x1   :  { %11 = vsyncpa [#allocation6], 0 }
   0x2   :  { %12 = vsyncpa [#allocation4], 0  ;;  %s18_s20 = sshll.u32 %s256_s0, 4  ;;  %s203_s21 = smov [#allocation2]   ;;  %s19_s20 = int_to_ptr.hbm [resolvable:$true] %s18_s20 }
   0x3   :  { %s20_s22 = sshll.u32 %s203_s21, 4  ;;  %s28_s25 = sshll.u32 %s257_s1, 4  ;;  %s21_s22 = int_to_ptr.vmem [resolvable:$true] %s20_s22  ;;  %s29_s25 = int_to_ptr.hbm [resolvable:$true] %s28_s25 }
   0x4   :  { %23 = dma.hbm_to_vmem [thread:$0]  %s19_s20, 64, %s21_s22, [#allocation3]  }
   0x5   :  { %s204_s26 = smov [#allocation5]   ;;  %s205_s28 = smov 128  }
   0x6   :  { %s30_s27 = sshll.u32 %s204_s26, 4  ;;  %s206_s29 = smov 8   ;;  %s31_s27 = int_to_ptr.vmem [resolvable:$true] %s30_s27 }
   0x7   :  { %36 = dma.hbm_to_vmem [thread:$0]  %s29_s25, 512, %s31_s27, [#allocation6], %s205_s28, %s205_s28, %s206_s29  }
   0x8   :  { %197 = dma.done.wait [#allocation3], 64  }
   0x9   :  { %198 = vsyncadd [#allocation3], 4294967232 }
   0xa   :  { %199 = dma.done.wait [#allocation6], 512  }
   0xb   :  { %200 = vsyncadd [#allocation6], 4294966784  ;;  %v55_v0 = vld [vmem:[#allocation5 + $0x18] sm:$0xff]  ;;  %v54_v1 = vld [vmem:[#allocation5 + $0x10] sm:$0xff]  ;;  %vm60_vm0 = vcmask 261120   ;;  %s207_s9 = smov [#allocation7]  }
   0xc   :  { %76 = vmatpush.msra.mxu0 %v55_v0  ;;  %v53_v2 = vld [vmem:[#allocation5 + $0x8] sm:$0xff]  ;;  %v52_v3 = vld [vmem:[#allocation5] sm:$0xff]  ;;  %v51_v4 = vld [vmem:[#allocation2] sm:$0xf]  ;;  %s101_s10 = sshll.u32 %s207_s9, 4  ;;  %s103_s13 = sshll.u32 %s261_s5, 4  ;;  %s102_s10 = int_to_ptr.vmem [resolvable:$true] %s101_s10  ;;  %s104_s13 = int_to_ptr.hbm [resolvable:$true] %s103_s13 }
   0xd   :  { %v120_v5 = vld [vmem:[%s258_s2] ss:$0 sm:$0xff] }
   0xe   :  { %77 = vmatpush.msra.mxu0 %v54_v1  ;;  %v121_v8 = vld [vmem:[%s259_s3] ss:$0 sm:$0xff] }
   0xf   :  { %v122_v9 = vld [vmem:[%s260_s4] ss:$0 sm:$0xff] }
  0x10   :  { %78 = vmatpush.msra.mxu0 %v53_v2 }
  0x12   :  { %79 = vmatpush.msra.mxu0 %v52_v3 }
  0x13   :  { %114 = vmatmul.msk.f32.vlgmr.msra.gmra.mxu0 %vm60_vm0, %v51_v4 }
  0x90   :  { %v81_v6 = vpop.f32.mrf.mxu0 }
  0x91   :  { %v82_v7 = vadd.f32 %v120_v5, %v81_v6 }
  0x93   :  { %123 = vtanh.f32 %v82_v7 }
  0x99   :  { %v124_v10 = vpop.eup %123 }
  0x9a   :  { %v89_v11 = vmul.f32 %v124_v10, %v121_v8 }
  0x9c   :  { %v94_v12 = vadd.f32 %v122_v9, %v89_v11 }
  0x9e   :  { %95 = vst [vmem:[#allocation7] sm:$0xf] %v94_v12 }
  0x9f   :  { %106 = dma.vmem_to_hbm [thread:$0]  %s102_s10, 64, %s104_s13, [#allocation4]  }
  0xa0   :  { %201 = dma.done.wait [#allocation4], 64  }
  0xa1   :  { %202 = vsyncadd [#allocation4], 4294967232 }
  0xa2   :  { %111 = vsyncpa [#allocation3], 1 }
  0xa3   :  { %112 = vsyncpa [#allocation6], 1 }
  0xa4   :  { %113 = vsyncpa [#allocation4], 1 }

</bundles_post_ra>
